<compile_context>
chip_gen: v5e
topology: v5e:2x2
jax: 0.10.0
libtpu: 0.0.40
codegen_flags: <defaults>
</compile_context>

<pallas_src>
import functools

import jax
import jax.numpy as jnp
from jax.experimental import pallas as pl
from jax.experimental.pallas import tpu as pltpu

EPS = 0.0          # DenseGINConv default eps
NEG_SLOPE = 0.01   # nn.LeakyReLU default negative_slope
LANE = 128


def _round_up(v, m):
    return ((v + m - 1) // m) * m


def _sublane(itemsize):
    # native sublane packing for a given element size (f32 / bf16 / int8)
    return {4: 8, 2: 16, 1: 32}[itemsize]


def _physical_vmem_bytes():
    """Per-core VMEM capacity; conservative fallback (v7x = 64 MiB per TC)."""
    try:
        info = pltpu.get_tpu_info()
        v = getattr(info, "vmem_capacity_bytes", None)
        if v:
            return int(v)
    except Exception:
        pass
    return 64 << 20


def _vmem_needed(bb, n, fin, fp, adj_itemsize, out_itemsize):
    """Padded VMEM footprint of one grid step: double-buffered streaming tiles
    + single-buffered weight/bias + in-kernel f32 intermediates."""
    n_lane = _round_up(n, LANE)
    fin_lane = _round_up(fin, LANE)
    fp_lane = _round_up(fp, LANE)
    x_t = bb * _round_up(n, 16) * fin_lane * 2                          # bf16
    adj_t = bb * _round_up(n, _sublane(adj_itemsize)) * n_lane * adj_itemsize
    out_t = bb * _round_up(n, _sublane(out_itemsize)) * fp_lane * out_itemsize
    interm = 2 * bb * _round_up(n, 8) * max(fin_lane, fp_lane) * 4      # f32 agg/h/xw
    w_t = _round_up(fin, 16) * fp_lane * 2                              # bf16, 1 buffer
    b_t = 8 * fp_lane * 4                                               # f32, 1 buffer
    return 2 * (x_t + adj_t + out_t) + interm + w_t + b_t


def _pick_block_b(B, n, fin, fp, adj_itemsize, out_itemsize, budget_bytes):
    """Largest divisor of B whose padded working set fits the budget, while
    keeping >= 4 grid steps (>= 2 for tiny B) for megacore + pipelining."""
    if B >= 4:
        max_bb = B // 4
    elif B >= 2:
        max_bb = B // 2
    else:
        max_bb = 1
    best = 1
    for cand in range(1, max_bb + 1):
        if B % cand:
            continue
        if _vmem_needed(cand, n, fin, fp, adj_itemsize, out_itemsize) <= budget_bytes:
            best = cand
    return best


def _layer_rd_kernel(x_ref, adj_ref, w_ref, b_ref, o_ref, *, bb, n, fin, fp,
                     reassociate):
    # x_ref : (bb, n, fin) bf16    adj_ref : (bb, n, n) bf16 | int8
    # w_ref : (fin, fp)    bf16    b_ref   : (1, fp)    f32
    # o_ref : (bb, n, fp)  f32 | bf16
    x = x_ref[...]
    adj = adj_ref[...]
    if adj.dtype != jnp.bfloat16:
        # int8 adjacency is DMA'd at 1 byte/elem; the VPU cast hides under DMA.
        adj = adj.astype(jnp.float32).astype(jnp.bfloat16)
    w = w_ref[...]
    b = b_ref[...]

    if reassociate:
        # y = (1+eps)*(x@W) + adj@(x@W) + b   (identical algebra; cheaper when
        # padded fp < padded fin: the N^2-scaled matmul runs at width fp)
        xw = jnp.dot(x.reshape(bb * n, fin), w,
                     preferred_element_type=jnp.float32).reshape(bb, n, fp)
        agg = jnp.einsum("bij,bjf->bif", adj, xw.astype(jnp.bfloat16),
                         preferred_element_type=jnp.float32)
        z = agg + b
        z = z + ((1.0 + EPS) * xw if EPS != 0.0 else xw)
    else:
        # agg = adj @ x per graph (bf16 MXU operands, f32 accumulation)
        # TODO(synk): for small N (<=64) pack Bb graphs into a block-diagonal
        #             (Bb*N, Bb*N) adjacency built in VMEM so the aggregation
        #             becomes one dense MXU matmul instead of Bb padded tiles.
        agg = jnp.einsum("bij,bjf->bif", adj, x,
                         preferred_element_type=jnp.float32)       # (bb,n,fin)
        xf = x.astype(jnp.float32)
        h = agg + ((1.0 + EPS) * xf if EPS != 0.0 else xf)
        # Single folded, lane-dense Linear on the MXU
        z = jnp.dot(h.reshape(bb * n, fin).astype(jnp.bfloat16), w,
                    preferred_element_type=jnp.float32).reshape(bb, n, fp) + b

    # LeakyReLU
    y = jnp.where(z > 0, z, NEG_SLOPE * z)

    # Dropout: eval-mode identity.
    # TODO(synk): training-mode dropout would use pltpu.prng_seed /
    #             pltpu.stateful_bernoulli and rescale by 1/(1-p).
    o_ref[...] = y.astype(o_ref.dtype)


def prepare_layer_rd_params(weight, bias):
    """Hoisted once-per-forward parameter prep.
    weight: (Fout, Fin) PyTorch-style, bias: (Fout,).
    Returns lane-dense, zero-padded (w_t (Fin,Fp) bf16, b2 (1,Fp) f32)."""
    Fout, Fin = weight.shape
    Fp = pl.cdiv(Fout, LANE) * LANE
    w_t = jnp.zeros((Fin, Fp), jnp.bfloat16).at[:, :Fout].set(
        weight.T.astype(jnp.bfloat16))
    b2 = jnp.zeros((1, Fp), jnp.float32).at[:, :Fout].set(
        bias.astype(jnp.float32))
    return w_t, b2


def layer_rd(x, adj, w_t, b2, *, n_outputs, adj_int8=False,
             out_dtype=jnp.float32, keep_padded=False):
    """x: (B,N,Fin), adj: (B,N,N), w_t/b2 from prepare_layer_rd_params.
    Returns (B, N, n_outputs) in out_dtype (or the padded (B,N,Fp) slab when
    keep_padded=True, for chaining into another padded layer)."""
    B, N, Fin = x.shape
    Fp = w_t.shape[1]

    # bf16 / int8 streaming operands (casts skipped if the caller hoisted them)
    x_in = x if x.dtype == jnp.bfloat16 else x.astype(jnp.bfloat16)
    if adj_int8:
        # exact only for small-integer ({0,1,...}) adjacency; halves adj HBM BW
        adj_in = adj if adj.dtype == jnp.int8 else adj.astype(jnp.int8)
    else:
        adj_in = adj if adj.dtype == jnp.bfloat16 else adj.astype(jnp.bfloat16)

    out_itemsize = jnp.dtype(out_dtype).itemsize
    adj_itemsize = jnp.dtype(adj_in.dtype).itemsize

    physical = _physical_vmem_bytes()
    budget = int(physical * 0.80)
    Bb = _pick_block_b(B, N, Fin, Fp, adj_itemsize, out_itemsize, budget)
    needed = _vmem_needed(Bb, N, Fin, Fp, adj_itemsize, out_itemsize)
    vmem_limit = int(min(max(needed * 5 // 4, 32 << 20), int(physical * 0.85)))

    # Reassociate only when it shrinks the N^2-scaled MXU width after lane pad.
    reassociate = pl.cdiv(Fp, LANE) < pl.cdiv(Fin, LANE)

    kernel = functools.partial(_layer_rd_kernel, bb=Bb, n=N, fin=Fin, fp=Fp,
                               reassociate=reassociate)

    out_padded = pl.pallas_call(
        kernel,
        out_shape=jax.ShapeDtypeStruct((B, N, Fp), out_dtype),
        grid_spec=pltpu.PrefetchScalarGridSpec(
            num_scalar_prefetch=0,
            grid=(B // Bb,),
            in_specs=[
                pl.BlockSpec((Bb, N, Fin), lambda b: (b, 0, 0)),
                pl.BlockSpec((Bb, N, N), lambda b: (b, 0, 0)),
                # constant index map + single buffer: DMA'd once, no dup VMEM
                pl.BlockSpec((Fin, Fp), lambda b: (0, 0),
                             pipeline_mode=pl.Buffered(1)),
                pl.BlockSpec((1, Fp), lambda b: (0, 0),
                             pipeline_mode=pl.Buffered(1)),
            ],
            out_specs=pl.BlockSpec((Bb, N, Fp), lambda b: (b, 0, 0)),
        ),
        compiler_params=pltpu.CompilerParams(
            dimension_semantics=("parallel",),
            vmem_limit_bytes=vmem_limit),
    )(x_in, adj_in, w_t, b2)

    if keep_padded or Fp == n_outputs:
        return out_padded
    return out_padded[..., :n_outputs]


def reference(x, adj, weight, bias):
    h = (1.0 + EPS) * x + jnp.einsum("bij,bjf->bif", adj, x)
    z = jnp.einsum("bnf,of->bno", h, weight) + bias
    return jnp.where(z > 0, z, NEG_SLOPE * z)


if __name__ == "__main__":
    key = jax.random.PRNGKey(0)
    B, N, Fin, Fout = 2, 16, 32, 32

    kx, ka, kw, kb = jax.random.split(key, 4)
    x = jax.random.normal(kx, (B, N, Fin), dtype=jnp.float32)
    # symmetric-ish dense adjacency with self loops (integer-valued: {0,1,2})
    a = jax.random.uniform(ka, (B, N, N), dtype=jnp.float32)
    adj = ((a + jnp.swapaxes(a, 1, 2)) > 1.0).astype(jnp.float32)
    adj = adj + jnp.eye(N, dtype=jnp.float32)[None]

    # deterministic Linear(Fin, Fout) params (PyTorch kaiming-uniform-style bound)
    bound = 1.0 / jnp.sqrt(Fin)
    weight = jax.random.uniform(kw, (Fout, Fin), minval=-bound, maxval=bound,
                                dtype=jnp.float32)
    bias = jax.random.uniform(kb, (Fout,), minval=-bound, maxval=bound,
                              dtype=jnp.float32)

    # Hoisted, once-per-forward prep: padded weight/bias, int8 adjacency, bf16 x.
    w_t, b2 = prepare_layer_rd_params(weight, bias)
    adj_i8 = adj.astype(jnp.int8)     # exact: adjacency values are small ints
    x_bf = x.astype(jnp.bfloat16)

    fwd = jax.jit(functools.partial(layer_rd, n_outputs=Fout, adj_int8=True))
    out = fwd(x_bf, adj_i8, w_t, b2)
    jax.block_until_ready(out)

    ref = reference(x, adj, weight, bias)
    # bf16 MXU operands -> compare with bf16-level tolerance against f32 ref
    assert out.shape == ref.shape, "shape mismatch vs reference"
    assert jnp.allclose(out, ref, atol=3e-2, rtol=3e-2), "mismatch vs reference"
    print("KERNEL_OK")
</pallas_src>

<mosaic_0001>
module attributes {stable_mosaic.version = 11 : i64} {
  func.func @_layer_rd_kernel(%arg0: i32, %arg1: memref<1x16x32xbf16, #tpu.memory_space<vmem>>, %arg2: memref<1x16x16xi8, #tpu.memory_space<vmem>>, %arg3: memref<32x128xbf16, #tpu.memory_space<vmem>>, %arg4: memref<1x128xf32, #tpu.memory_space<vmem>>, %arg5: memref<1x16x128xf32, #tpu.memory_space<vmem>>) attributes {dimension_semantics = [#tpu.dimension_semantics<parallel>], iteration_bounds = array<i64: 2>, scalar_prefetch = 0 : i64, scratch_operands = 0 : i64, tpu.core_type = #tpu.core_type<tc>, window_params = [{transform_indices = @transform_0, window_bounds = array<i64: 1, 16, 32>}, {transform_indices = @transform_1, window_bounds = array<i64: 1, 16, 16>}, {pipeline_mode = #tpu.pipeline_mode<synchronous>, transform_indices = @transform_2, window_bounds = array<i64: 32, 128>}, {pipeline_mode = #tpu.pipeline_mode<synchronous>, transform_indices = @transform_3, window_bounds = array<i64: 1, 128>}, {transform_indices = @transform_4, window_bounds = array<i64: 1, 16, 128>}]} {
    %c0 = arith.constant 0 : index
    %c0_0 = arith.constant 0 : index
    %c0_1 = arith.constant 0 : index
    %0 = vector.load %arg1[%c0, %c0_0, %c0_1] : memref<1x16x32xbf16, #tpu.memory_space<vmem>>, vector<1x16x32xbf16>
    %c0_2 = arith.constant 0 : index
    %c0_3 = arith.constant 0 : index
    %c0_4 = arith.constant 0 : index
    %1 = vector.load %arg2[%c0_2, %c0_3, %c0_4] : memref<1x16x16xi8, #tpu.memory_space<vmem>>, vector<1x16x16xi8>
    %2 = arith.sitofp %1 : vector<1x16x16xi8> to vector<1x16x16xf32>
    %3 = arith.truncf %2 : vector<1x16x16xf32> to vector<1x16x16xbf16>
    %c0_5 = arith.constant 0 : index
    %c0_6 = arith.constant 0 : index
    %4 = vector.load %arg3[%c0_5, %c0_6] : memref<32x128xbf16, #tpu.memory_space<vmem>>, vector<32x128xbf16>
    %c0_7 = arith.constant 0 : index
    %c0_8 = arith.constant 0 : index
    %5 = vector.load %arg4[%c0_7, %c0_8] : memref<1x128xf32, #tpu.memory_space<vmem>>, vector<1x128xf32>
    "tpu.trace_start"() <{level = 10 : i32, message = "bij,bjf->bif"}> : () -> ()
    %cst = arith.constant dense<0.000000e+00> : vector<1x16x32xf32>
    %6 = tpu.matmul %3, %0, %cst {dimension_numbers = #tpu.dot_dimension_numbers<[2], [1], [1], [2], [0, 0, 0, 1, 1, 2], [0], [0]>} : vector<1x16x16xbf16>, vector<1x16x32xbf16>, vector<1x16x32xf32> -> vector<1x16x32xf32>
    "tpu.trace_stop"() : () -> ()
    %7 = arith.extf %0 : vector<1x16x32xbf16> to vector<1x16x32xf32>
    %8 = arith.addf %6, %7 : vector<1x16x32xf32>
    %9 = vector.shape_cast %8 : vector<1x16x32xf32> to vector<16x32xf32>
    %10 = arith.truncf %9 : vector<16x32xf32> to vector<16x32xbf16>
    %cst_9 = arith.constant dense<0.000000e+00> : vector<16x128xf32>
    %11 = tpu.matmul %10, %4, %cst_9 {dimension_numbers = #tpu.dot_dimension_numbers<[1], [0], [0], [1], [0, 0, 1, 1], [], []>} : vector<16x32xbf16>, vector<32x128xbf16>, vector<16x128xf32> -> vector<16x128xf32>
    %12 = vector.shape_cast %11 : vector<16x128xf32> to vector<1x16x128xf32>
    %13 = vector.shape_cast %5 : vector<1x128xf32> to vector<1x1x128xf32>
    %14 = vector.broadcast %13 : vector<1x1x128xf32> to vector<1x16x128xf32>
    %15 = arith.addf %12, %14 : vector<1x16x128xf32>
    %cst_10 = arith.constant 0.000000e+00 : f32
    %16 = vector.broadcast %cst_10 : f32 to vector<1x16x128xf32>
    %17 = arith.cmpf ogt, %15, %16 : vector<1x16x128xf32>
    %cst_11 = arith.constant 0.00999999977 : f32
    %18 = vector.broadcast %cst_11 : f32 to vector<1x16x128xf32>
    %19 = arith.mulf %18, %15 : vector<1x16x128xf32>
    %20 = arith.select %17, %15, %19 : vector<1x16x128xi1>, vector<1x16x128xf32>
    %c0_12 = arith.constant 0 : index
    %c0_13 = arith.constant 0 : index
    %c0_14 = arith.constant 0 : index
    %21 = vector.load %arg5[%c0_12, %c0_13, %c0_14] : memref<1x16x128xf32, #tpu.memory_space<vmem>>, vector<1x16x128xf32>
    tpu.vector_store %arg5[%c0_12, %c0_13, %c0_14], %20 {strides = array<i32>} : memref<1x16x128xf32, #tpu.memory_space<vmem>>, vector<1x16x128xf32>,
    return
  }
  func.func @transform_0(%arg0: i32) -> (i32, i32, i32) {
    %c0_i32 = arith.constant 0 : i32
    %c0_i32_0 = arith.constant 0 : i32
    %c0_i32_1 = arith.constant 0 : i32
    return %arg0, %c0_i32, %c0_i32_0 : i32, i32, i32
  }
  func.func @transform_1(%arg0: i32) -> (i32, i32, i32) {
    %c0_i32 = arith.constant 0 : i32
    %c0_i32_0 = arith.constant 0 : i32
    %c0_i32_1 = arith.constant 0 : i32
    return %arg0, %c0_i32, %c0_i32_0 : i32, i32, i32
  }
  func.func @transform_2(%arg0: i32) -> (i32, i32) {
    %c0_i32 = arith.constant 0 : i32
    %c0_i32_0 = arith.constant 0 : i32
    %c0_i32_1 = arith.constant 0 : i32
    return %c0_i32, %c0_i32_0 : i32, i32
  }
  func.func @transform_3(%arg0: i32) -> (i32, i32) {
    %c0_i32 = arith.constant 0 : i32
    %c0_i32_0 = arith.constant 0 : i32
    %c0_i32_1 = arith.constant 0 : i32
    return %c0_i32, %c0_i32_0 : i32, i32
  }
  func.func @transform_4(%arg0: i32) -> (i32, i32, i32) {
    %c0_i32 = arith.constant 0 : i32
    %c0_i32_0 = arith.constant 0 : i32
    %c0_i32_1 = arith.constant 0 : i32
    return %arg0, %c0_i32, %c0_i32_0 : i32, i32, i32
  }
}

</mosaic_0001>

<bundles_post_ra>
// kernel: layer_rd.1
= control target key start
LH: loop header
LB: loop body
LE: loop exit
PB: predicated region body
PF: predicated region fallthrough
CT: control target
= control target key end

     0   :  { %s979_s0 = inlined_call_operand.hbm [shape: bf16[2,16,32], index: 0, kind: input, shape index: {}]   ;;  %s980_s1 = inlined_call_operand.hbm [shape: s8[2,16,16], index: 1, kind: input, shape index: {}]   ;;  %s981_s2 = inlined_call_operand.hbm [shape: bf16[32,128], index: 2, kind: input, shape index: {}]   ;;  %s982_s3 = inlined_call_operand.vmem [shape: f32[1,128], index: 3, kind: input, shape index: {}]   ;;  %s983_s4 = inlined_call_operand.hbm [shape: f32[2,16,128], index: 4, kind: output, shape index: {}]  }
   0x1   :  { %987 = sst [smem:[#allocation15_spill]] %s981_s2 }
   0x2   :  { %9 = vsyncpa [#allocation3], 0 }
   0x3   :  { %11 = vsyncpa [#allocation3 + $0x1], 0 }
   0x4   :  { %12 = vsyncpa [#allocation6], 0 }
   0x5   :  { %14 = vsyncpa [#allocation6 + $0x1], 0 }
   0x6   :  { %15 = vsyncpa [#allocation4], 0 }
   0x7   :  { %17 = vsyncpa [#allocation4 + $0x1], 0  ;;  %s799_s15 = smov 0   ;;  %s801_s16 = smov 0  }
   0x8   :  { %s803_s17 = smov 0   ;;  %s805_s18 = smov 0  }
   0x9 LB: > { %988 = sst [smem:[#allocation13_spill]] %s761_s17  ;;  %s820_s19 = sadd.s32 4294967295, %s765_s18   ;;  %s765_s18 = sphi %s805_s18, %s1003_s18   ;;  %s761_s17 = sphi %s803_s17, %s1000_s17   ;;  %s757_s16 = sphi %s801_s16, %s1002_s16   ;;  %s753_s15 = sphi %s799_s15, %s1001_s15  }
   0xa   : > { %s488_s20 = sadd.s32 4294967294, %s765_s18   ;;  %p43_p0 = scmp.ne.s32.totalorder %s757_s16, %s753_s15 }
   0xb   : > { %p44_p1 = scmp.eq.s32.totalorder %s820_s19, 0  ;;  %p135_p2 = scmp.eq.s32.totalorder %s820_s19, 1 }
   0xc   : > { %p141_p3 = scmp.eq.s32.totalorder %s488_s20, 1  ;;  %p489_p5 = scmp.ge.s32.totalorder %s765_s18, 1 }
   0xd   : > { %p829_p4 = por %p44_p1, %p43_p0  ;;  %p148_p7 = scmp.lt.s32.totalorder %s765_s18, 3 }
   0xe   : > { %p834_p6 = por %p141_p3, %p43_p0  ;;  %s991_s2 = sld [smem:[#allocation15_spill]] }
   0xf   : > { %p842_p8 = pnand %p489_p5, %p148_p7  ;;  %s767_s27 = smov [#allocation7]  }
  0x10   : > { %s161_s28 = sshll.u32 %s767_s27, 4  ;;  %s852_s29 = sadd.s32 1, %s765_s18   ;;  %s162_s28 = int_to_ptr.vmem [resolvable:$true] %s161_s28 }
  0x11   : > { %p542_p9 = pneg %p842_p8  ;;  %s984_s30 = smov 64  }
  0x12   : > { %s985_s5 = smov 4   ;;  %s27_s6 = ssub.s32 %s765_s18, %s852_s29 }
  0x13   : > { %p543_p10 = pnand %p542_p9, %p44_p1  ;;  %s30_s7 = sadd.s32 1, %s761_s17 }
  0x14   : > { %s159_s25 = sshll.u32 %s991_s2, 4  ;;  %p28_p12 = scmp.eq.s32.totalorder %s27_s6, 0  ;;  %s160_s25 = int_to_ptr.hbm [resolvable:$true] %s159_s25 }
  0x15   : > { %545 = dma.hbm_to_vmem [thread:$0]  (!%p543_p10), %s160_s25, 256, %s162_s28, [#allocation6], %s984_s30, %s984_s30, %s985_s5  }
  0x16   : > { %p37_p13 = scmp.ne.s32.totalorder %s761_s17, %s757_s16  ;;  %p38_p0 = scmp.eq.s32.totalorder %s765_s18, 0 }
  0x17   : > { %p558_p3 = scmp.lt.s32.totalorder %s765_s18, 2  ;;  %s874_s10 = sand.u32 1, %s761_s17  }
  0x18   : > { %s865_s8 = scalar_select %p28_p12, %s761_s17, %s30_s7  }
  0x19   : > { %p39_p5 = por %p38_p0, %p37_p13  ;;  %p869_p7 = por %p135_p2, %p37_p13 }
  0x1a   : > { %993 = sst [smem:[#allocation14_spill]] %s865_s8  ;;  %s522_s11 = sshll.u32 %s765_s18, 3 }
  0x1b   : > { %s492_s12 = sshll.u32 %s874_s10, 3  ;;  %s187_s20 = scalar_lea.hbm %s979_s0, %s522_s11 }
  0x1c   : > { %s188_s23 = sshll.u32 %s187_s20, 4  ;;  %s182_s24 = scalar_lea.vmem [#allocation2], %s492_s12  ;;  %s189_s23 = int_to_ptr.hbm [resolvable:$true] %s188_s23 }
  0x1d   : > { %s190_s25 = sshll.u32 %s182_s24, 4  ;;  %p883_p2 = pnand %p558_p3, %p39_p5  ;;  %s191_s25 = int_to_ptr.vmem [resolvable:$true] %s190_s25 }
  0x1e   : > { %s200_s28 = sand.u32 1, %s765_s18   ;;  %s495_s6 = sshll.u32 %s874_s10, 2 }
  0x1f   : > { %s179_s7 = scalar_lea.sflag [#allocation3], %s874_s10  ;;  %s631_s30 = sshra.s32 %s189_s23, 4  ;;  %s632_s30 = int_to_ptr.hbm [resolvable:$true] %s631_s30 }
  0x20   : > { %s633_s5 = scalar_lea.hbm %s632_s30, 8  ;;  %p635_p10 = pneg %p883_p2 }
  0x21   : > { %p634_p9 = scmp.ne.s32.totalorder %s632_s30, %s633_s5  ;;  %s638_s13 = scalar_lea.hbm %s979_s0, 16 }
  0x22   : > { %p639_p0 = scmp.lt.s32.totalorder %s632_s30, %s979_s0  ;;  %p640_p3 = scmp.lt.s32.totalorder %s638_s13, %s633_s5 }
  0x23   : > { %p636_p12 = pnand %p635_p10, %p634_p9 }
  0x24   : > { %p641_p5 = por %p640_p3, %p639_p0 }
  0x25   : > { %p637_p13 = pneg %p636_p12 }
  0x27   : > { %p642_p11 = pnand %p641_p5, %p637_p13 }
  0x29   : > { %645 = shalt.err (!%p642_p11)
}
  0x2a   : > { %s996_s10 = smov 4   ;;  %s997_s24 = smov 64  }
  0x2b   : > { %549 = dma.hbm_to_vmem [thread:$0]  (!%p883_p2), %s189_s23, 128, %s191_s25, %s179_s7, %s997_s24, %s997_s24, %s996_s10  }
  0x2c   : > { %s523_s2 = sshll.u32 %s765_s18, 2  ;;  %s204_s8 = scalar_lea.vmem [#allocation5], %s495_s6 }
  0x2d   : > { %s212_s11 = sshll.u32 %s204_s8, 4  ;;  %s209_s14 = scalar_lea.hbm %s980_s1, %s523_s2  ;;  %s213_s11 = int_to_ptr.vmem [resolvable:$true] %s212_s11 }
  0x2e   : > { %s210_s30 = sshll.u32 %s209_s14, 4  ;;  %s201_s5 = scalar_lea.sflag [#allocation6], %s200_s28  ;;  %s211_s30 = int_to_ptr.hbm [resolvable:$true] %s210_s30 }
  0x2f   : > { %s661_s13 = sshra.s32 %s211_s30, 4  ;;  %s668_s8 = scalar_lea.hbm %s980_s1, 8  ;;  %s662_s13 = int_to_ptr.hbm [resolvable:$true] %s661_s13 }
  0x30   : > { %s663_s20 = scalar_lea.hbm %s662_s13, 4  ;;  %p669_p13 = scmp.lt.s32.totalorder %s662_s13, %s980_s1 }
  0x31   : > { %p664_p11 = scmp.ne.s32.totalorder %s662_s13, %s663_s20  ;;  %p670_p0 = scmp.lt.s32.totalorder %s668_s8, %s663_s20 }
  0x33   : > { %p666_p9 = pnand %p664_p11, %p635_p10  ;;  %p671_p3 = por %p670_p0, %p669_p13 }
  0x35   : > { %p667_p12 = pneg %p666_p9 }
  0x37   : > { %p672_p5 = pnand %p671_p3, %p667_p12 }
  0x39   : > { %675 = shalt.err (!%p672_p5)
}
  0x3a   : > { %s770_s2 = smov 32   ;;  %s771_s17 = smov 2  }
  0x3b   : > { %552 = dma.hbm_to_vmem [thread:$0]  (!%p883_p2), %s211_s30, 64, %s213_s11, %s201_s5, %s770_s2, %s770_s2, %s771_s17  }
  0x3c   : > { %224 = sbr.rel (%p842_p8) target bundleno = 363 (0x16b), region = 36  ;;  %s924_s28 = sand.u32 (!%p842_p8), 1, %s757_s16  }
  0x3d   : > { %s499_s10 = sshll.u32 (!%p842_p8), %s924_s28, 3  ;;  %s227_s24 = scalar_lea.sflag (!%p842_p8), [#allocation3], %s924_s28 }
  0x3e   : > { %s230_s12 = scalar_lea.vmem (!%p842_p8), [#allocation2], %s499_s10 }
  0x41   : > { %736 = dma.done.wait (%p829_p4), %s227_s24, 128  }
  0x42   : > { %738 = vsyncadd (%p829_p4), %s227_s24, 4294967168  ;;  %s236_s27 = sand.u32 1, %s820_s19   ;;  %s500_s26 = sshll.u32 %s924_s28, 2 }
  0x43   : > { %s237_s11 = scalar_lea.sflag [#allocation6], %s236_s27  ;;  %s240_s14 = scalar_lea.vmem [#allocation5], %s500_s26 }
  0x44   : > { %740 = dma.done.wait (%p829_p4), %s237_s11, 64  }
  0x45   : > { %742 = vsyncadd (%p829_p4), %s237_s11, 4294967232 }
  0x46   : > { %744 = dma.done.wait (%p44_p1), [#allocation6], 256  }
  0x47   : > { %746 = vsyncadd (%p44_p1), [#allocation6], 4294967040  ;;  %v524_v0 = vld [vmem:[%s230_s12] sm:$0xff]  ;;  %v529_v1 = vld [vmem:[%s240_s14] sm:$0xf]   ;;  %vm305_vm0 = vcmask 130048  }
  0x48   : > { %v530_v2 = vunpack.c.0.s8 %v529_v1  ;;  %v531_v3 = vunpack.c.1.s8 %v529_v1  ;;  %316 = vmatpush.bf16.msra.mxu0 %v524_v0  ;;  %v526_v11 = vld [vmem:[#allocation7 + $0x8] sm:$0xff]  ;;  %v525_v12 = vld [vmem:[#allocation7] sm:$0xff]  ;;  %vm336_vm1 = vcmask 261120   ;;  %s502_s5 = sshll.u32 %s924_s28, 4  ;;  %s527_s13 = sshll.u32 %s820_s19, 4 }
  0x49   : > { %346 = vmatpush.bf16.msra.mxu1 %v526_v11  ;;  %v277_v14 = vld [vmem:[%s230_s12] sm:$0xff]   ;;  %s379_s25 = scalar_lea.hbm %s983_s4, %s527_s13  ;;  %s275_s8 = scalar_lea.vmem [#allocation8], %s502_s5 }
  0x4a   : > { %v283_v4 = vcvt.s32.f32 %v530_v2  ;;  %v284_v5 = vcvt.s32.f32 %v531_v3  ;;  %v292_v15 = vunpack.c.l.bf16 %v277_v14  ;;  %v293_v16 = vunpack.c.h.bf16 %v277_v14  ;;  %v600_v21 = vld [vmem:[%s982_s3] ss:$0 sm:$0xff]  ;;  %s380_s6 = sshll.u32 %s275_s8, 4  ;;  %s382_s7 = sshll.u32 %s379_s25, 4  ;;  %s381_s6 = int_to_ptr.vmem [resolvable:$true] %s380_s6  ;;  %s383_s7 = int_to_ptr.hbm [resolvable:$true] %s382_s7 }
  0x4b   : > { %s368_s19 = scalar_lea.sflag [#allocation4], %s924_s28  ;;  %s705_s2 = sshra.s32 %s383_s7, 4  ;;  %s706_s2 = int_to_ptr.hbm [resolvable:$true] %s705_s2 }
  0x4c   : > { %v285_v6 = vpack.c.bf16 %v283_v4, %v283_v4  ;;  %v286_v7 = vpack.c.bf16 %v284_v5, %v284_v5  ;;  %s707_s17 = scalar_lea.hbm %s706_s2, 16  ;;  %s711_s12 = scalar_lea.hbm %s983_s4, 32 }
  0x4d   : > { %347 = vmatpush.bf16.msra.mxu1 %v525_v12  ;;  %p708_p1 = scmp.ne.s32.totalorder %s706_s2, %s707_s17  ;;  %p712_p2 = scmp.lt.s32.totalorder %s706_s2, %s983_s4 }
  0x4e   : > { %v296_v8 = vunpack.c.l.b16 %v285_v6  ;;  %v297_v9 = vunpack.c.l.b16 %v286_v7  ;;  %p713_p10 = scmp.lt.s32.totalorder %s711_s12, %s707_s17 }
  0x4f   : > { %p709_p4 = pnand %p708_p1, %p869_p7 }
  0x50   : > { %v298_v10 = vpack.c.b16 %v297_v9, %v296_v8  ;;  %p714_p11 = por %p713_p10, %p712_p2 }
  0x51   : > { %p710_p8 = pneg %p709_p4 }
  0x52   : > { %507 = vmatmul.msk.bf16.vlgmr.msra.gmra.mxu0 %vm305_vm0, %v298_v10 }
  0x53   : > { %p715_p9 = pnand %p714_p11, %p710_p8 }
  0xcf   : > { %v318_v13 = vpop.f32.mrf.mxu0 }
  0xd0   : > { %v319_v18 = vadd.f32 %v318_v13, %v292_v15 }
  0xd7   : > { %v320_v17 = vpop.f32.mrf.mxu0 }
  0xd8   : > { %v321_v19 = vadd.f32 %v320_v17, %v293_v16 }
  0xda   : > { %v323_v20 = vpack.c.bf16 %v321_v19, %v319_v18 }
  0xdc   : > { %516 = vmatmul.msk.bf16.vlgmr.msra.gmra.mxu1 %vm336_vm1, %v323_v20 }
 0x159   : > { %v349_v22 = vpop.f32.mrf.mxu1 }
 0x15a   : > { %v357_v23 = vadd.f32 %v600_v21, %v349_v22 }
 0x15c   : > { %vm359_vm2 = vcmp.gt.f32.partialorder %v357_v23, 0.0  ;;  %v361_v24 = vmul.f32 0.01, %v357_v23 }
 0x15e   : > { %v363_v25 = vsel %vm359_vm2, %v357_v23, %v361_v24 }
 0x15f   : > { %365 = vst [vmem:[%s275_s8] sm:$0xff] %v363_v25 }
 0x161   : > { %v351_v26 = vpop.f32.mrf.mxu1 }
 0x162   : > { %v358_v27 = vadd.f32 %v600_v21, %v351_v26 }
 0x164   : > { %vm360_vm3 = vcmp.gt.f32.partialorder %v358_v27, 0.0  ;;  %v362_v28 = vmul.f32 0.01, %v358_v27 }
 0x166   : > { %v364_v29 = vsel %vm360_vm3, %v358_v27, %v362_v28 }
 0x167   : > { %366 = vst [vmem:[%s275_s8 + $0x8] sm:$0xff] %v364_v29 }
 0x168   : > { %718 = shalt.err (!%p715_p9)
}
 0x169   : > { %s772_s28 = smov 128   ;;  %s773_s11 = smov 8  }
 0x16a   : > { %540 = dma.vmem_to_hbm [thread:$0]  (%p869_p7), %s381_s6, 256, %s383_s7, %s368_s19, %s772_s28, %s772_s28, %s773_s11  }
 0x16b PF: > { %s397_s14 = sand.u32 1, %s753_s15   ;;  %p998_p12 = scmp.ge.s32.totalorder %s765_s18, 2 }
 0x16c   : > { %s398_s21 = scalar_lea.sflag [#allocation4], %s397_s14 }
 0x16d   : > { %p554_p13 = pnand %p998_p12, %p834_p6 }
 0x16f   : > { %p555_p0 = pneg %p554_p13 }
 0x171   : > { %748 = dma.done.wait (%p555_p0), %s398_s21, 256  }
 0x172   : > { %750 = vsyncadd (%p555_p0), %s398_s21, 4294967040  ;;  %s999_s30 = sld [smem:[#allocation13_spill]]  ;;  %p20_p3 = scmp.ge.s32.totalorder %s852_s29, 4  }
 0x173   : > { %s1000_s17 = sld [smem:[#allocation14_spill]]  ;;  %s1001_s15 = smov %s757_s16 }
 0x174   : > { %s1003_s18 = smov %s852_s29  ;;  %22 = sbr.rel (!%p20_p3) target bundleno = 9 (0x9), region = 98 }
 0x178   : > { %s1002_s16 = smov %s999_s30 }
 0x179   :  { %404 = vsyncpa [#allocation3], 1 }
 0x17a   :  { %406 = vsyncpa [#allocation3 + $0x1], 1 }
 0x17b   :  { %407 = vsyncpa [#allocation6], 1 }
 0x17c   :  { %409 = vsyncpa [#allocation6 + $0x1], 1 }
 0x17d   :  { %410 = vsyncpa [#allocation4], 1 }
 0x17e   :  { %412 = vsyncpa [#allocation4 + $0x1], 1 }

</bundles_post_ra>
